<compile_context>
chip_gen: v7x
topology: tpu7x:2x2x1
jax: 0.10.0
libtpu: 0.0.40
codegen_flags: <defaults>
</compile_context>

<pallas_src>
import functools

import jax
import jax.numpy as jnp
from jax.experimental import pallas as pl
from jax.experimental.pallas import tpu as pltpu


def _round_up(x, m):
    return ((x + m - 1) // m) * m


def _mish(h):
    # Mish: x * tanh(softplus(x)) == x * (t^2 + 2t) / (t^2 + 2t + 2), t = e^x.
    # Clamp the exp input (ratio is already ~1 at x=20) to avoid f32 overflow.
    # exp and the approximate reciprocal both go to the EUP slot; the VPU only
    # sees cheap mul/add. Elementwise stays f32.
    t = jnp.exp(jnp.minimum(h, 20.0))
    num = t * (t + 2.0)
    return h * (num * pl.reciprocal(num + 2.0, approx=True))


def _film_kernel_fused(img_ref, prop_ref, w1_ref, b1_ref, w2_ref, b2_ref,
                       out_ref, *, d, append):
    """Single (TB,H)@(H,2D) second matmul; used when d % 128 == 0 so the
    gamma/beta split (and the append boundary) is a free 128-aligned slice."""
    img = img_ref[...]                                            # (TB, D) f32
    prop = prop_ref[...]                                          # (TB, C) f32

    mm_dtype = w1_ref.dtype                                       # f32 or bf16 (pre-cast)
    h = jnp.dot(prop.astype(mm_dtype), w1_ref[...],
                preferred_element_type=jnp.float32) + b1_ref[...]
    h = _mish(h)

    gb = jnp.dot(h.astype(w2_ref.dtype), w2_ref[...],
                 preferred_element_type=jnp.float32) + b2_ref[...]
    gamma, beta = gb[:, :d], gb[:, d:]                            # 128-aligned slice
    film = (gamma * img + beta).astype(out_ref.dtype)

    if append:
        out_ref[:, :d] = film                                     # unmasked, aligned
        out_ref[:, d:] = prop.astype(out_ref.dtype)               # masked tail cols
    else:
        out_ref[...] = film


def _film_kernel_split(img_ref, prop_ref, w1_ref, b1_ref,
                       w2g_ref, b2g_ref, w2b_ref, b2b_ref, out_ref):
    """gamma/beta weights pre-split in the wrapper; used when d % 128 != 0 so
    each matmul output slab is lane-dense and no slice crosses a lane tile."""
    img = img_ref[...]
    prop = prop_ref[...]

    mm_dtype = w1_ref.dtype
    h = jnp.dot(prop.astype(mm_dtype), w1_ref[...],
                preferred_element_type=jnp.float32) + b1_ref[...]
    h = _mish(h)

    h_mm = h.astype(w2g_ref.dtype)
    gamma = jnp.dot(h_mm, w2g_ref[...],
                    preferred_element_type=jnp.float32) + b2g_ref[...]
    beta = jnp.dot(h_mm, w2b_ref[...],
                   preferred_element_type=jnp.float32) + b2b_ref[...]
    out_ref[...] = (gamma * img + beta).astype(out_ref.dtype)


def film_forward(img, proprio, params, append=False, *,
                 block_b=1024, min_grid_steps=2,
                 matmul_dtype=jnp.float32, out_dtype=jnp.float32):
    B, D = img.shape
    C = proprio.shape[-1]
    H = params["w1"].shape[-1]

    # Weights cast ONCE here for the bf16 MXU path (no per-step in-kernel casts,
    # half the weight DMA bytes). Biases stay f32: they add into the f32
    # accumulator and their traffic is negligible. proprio stays f32 so the
    # appended copy keeps full precision.
    w1 = params["w1"].astype(matmul_dtype)
    b1 = params["b1"].astype(jnp.float32)
    w2 = params["w2"].astype(matmul_dtype)
    b2 = params["b2"].astype(jnp.float32)

    # Batch tile: multiple of 8 sublanes; mem-bound so go big (no MXU-M cap) but
    # keep >= min_grid_steps grid steps so both v7x TensorCores get work.
    tb = max(8, min(block_b, _round_up(pl.cdiv(B, min_grid_steps), 8)))
    grid = (pl.cdiv(B, tb),)          # ragged last block handled by Pallas masking

    fused = (D % 128 == 0)
    fuse_append = append and fused
    out_cols = D + C if fuse_append else D

    wbytes = jnp.dtype(matmul_dtype).itemsize
    obytes = jnp.dtype(out_dtype).itemsize
    cost = pl.CostEstimate(
        flops=2 * B * (C * H + H * 2 * D),
        transcendentals=2 * B * H,    # one exp + one approx-reciprocal per hidden elem
        bytes_accessed=(4 * B * (D + C) + obytes * B * out_cols
                        + wbytes * (C * H + 2 * H * D) + 4 * (H + 2 * D)),
    )

    img_spec = pl.BlockSpec((tb, D), lambda i: (i, 0))
    prop_spec = pl.BlockSpec((tb, C), lambda i: (i, 0))
    pin = lambda i: (0, 0)            # weights/biases resident in VMEM

    if fused:
        kernel = functools.partial(_film_kernel_fused, d=D, append=fuse_append)
        weight_args = (w1, b1, w2, b2)
        weight_specs = [
            pl.BlockSpec((C, H), pin),
            pl.BlockSpec((1, H), pin),
            pl.BlockSpec((H, 2 * D), pin),
            pl.BlockSpec((1, 2 * D), pin),
        ]
    else:
        kernel = _film_kernel_split
        weight_args = (w1, b1, w2[:, :D], b2[:, :D], w2[:, D:], b2[:, D:])
        weight_specs = [
            pl.BlockSpec((C, H), pin),
            pl.BlockSpec((1, H), pin),
            pl.BlockSpec((H, D), pin),
            pl.BlockSpec((1, D), pin),
            pl.BlockSpec((H, D), pin),
            pl.BlockSpec((1, D), pin),
        ]

    out = pl.pallas_call(
        kernel,
        out_shape=jax.ShapeDtypeStruct((B, out_cols), out_dtype),
        grid=grid,
        in_specs=[img_spec, prop_spec] + weight_specs,
        out_specs=pl.BlockSpec((tb, out_cols), lambda i: (i, 0)),
        compiler_params=pltpu.CompilerParams(
            dimension_semantics=("parallel",),
        ),
        cost_estimate=cost,
    )(img, proprio, *weight_args)

    if append and not fuse_append:
        # TODO(synk): fuse this concat in-kernel for D % 128 != 0 too (needs a
        # non-lane-aligned offset store); wrapper concat costs one extra HBM pass.
        out = jnp.concatenate([out, proprio.astype(out.dtype)], axis=-1)
    return out


def init_film_params(key, cond_dim, output_dim, hidden_dim=64):
    k1, k2, k3, k4 = jax.random.split(key, 4)
    s1 = 1.0 / jnp.sqrt(cond_dim)
    s2 = 1.0 / jnp.sqrt(hidden_dim)
    return {
        "w1": jax.random.uniform(k1, (cond_dim, hidden_dim), jnp.float32, -s1, s1),
        "b1": jax.random.uniform(k2, (1, hidden_dim), jnp.float32, -s1, s1),
        "w2": jax.random.uniform(k3, (hidden_dim, 2 * output_dim), jnp.float32, -s2, s2),
        "b2": jax.random.uniform(k4, (1, 2 * output_dim), jnp.float32, -s2, s2),
    }


def film_reference(img, proprio, params, append=False):
    # Pure-JAX reference mirroring the PyTorch forward.
    h = proprio @ params["w1"] + params["b1"]
    h = h * jnp.tanh(jax.nn.softplus(h))        # Mish
    gb = h @ params["w2"] + params["b2"]
    D = img.shape[-1]
    gamma, beta = gb[:, :D], gb[:, D:]          # chunk(2, dim=-1): gamma first
    out = gamma * img + beta
    if append:
        out = jnp.concatenate([out, proprio], axis=-1)
    return out


if __name__ == "__main__":
    cond_dim, output_dim, hidden_dim = 32, 128, 64

    key = jax.random.PRNGKey(0)
    (k_img, k_prop, k_params, k_img2, k_prop2,
     k_img3, k_prop3, k_params3) = jax.random.split(key, 8)
    params = init_film_params(k_params, cond_dim, output_dim, hidden_dim)

    # Tolerances: f32 path is exact math except the EUP approximate reciprocal
    # in the Mish rewrite; bf16-MXU path additionally rounds the matmul inputs.
    TOL32 = dict(atol=5e-3, rtol=5e-3)
    TOLBF = dict(atol=5e-2, rtol=5e-2)

    # --- small demo batch (single tile, fused gamma/beta matmul) -----------
    B = 8
    img = jax.random.normal(k_img, (B, output_dim), jnp.float32)
    proprio = jax.random.normal(k_prop, (B, cond_dim), jnp.float32)

    out = jax.block_until_ready(film_forward(img, proprio, params))
    ref = film_reference(img, proprio, params)
    assert out.shape == (B, output_dim)
    assert jnp.allclose(out, ref, **TOL32)

    # append=True: concat fused into the kernel (D=128 is lane-aligned).
    out_app = jax.block_until_ready(film_forward(img, proprio, params, append=True))
    ref_app = film_reference(img, proprio, params, append=True)
    assert out_app.shape == (B, output_dim + cond_dim)
    assert jnp.allclose(out_app, ref_app, **TOL32)

    # --- non-tile-multiple batch: multi-step grid + ragged last block, no pad
    B2 = 300
    img2 = jax.random.normal(k_img2, (B2, output_dim), jnp.float32)
    proprio2 = jax.random.normal(k_prop2, (B2, cond_dim), jnp.float32)
    out2 = jax.block_until_ready(film_forward(img2, proprio2, params, block_b=128))
    ref2 = film_reference(img2, proprio2, params)
    assert out2.shape == (B2, output_dim)
    assert jnp.allclose(out2, ref2, **TOL32)

    # --- bf16-MXU fast path (weights pre-cast once in the wrapper) ----------
    out_bf16 = jax.block_until_ready(
        film_forward(img2, proprio2, params, block_b=128, matmul_dtype=jnp.bfloat16))
    assert jnp.allclose(out_bf16, ref2, **TOLBF)

    # --- bf16 output (optional bandwidth saver) ------------------------------
    out_bf16o = jax.block_until_ready(
        film_forward(img2, proprio2, params, block_b=128,
                     matmul_dtype=jnp.bfloat16, out_dtype=jnp.bfloat16))
    assert out_bf16o.dtype == jnp.bfloat16
    assert jnp.allclose(out_bf16o.astype(jnp.float32), ref2, **TOLBF)

    # --- split-weight path: output_dim not a multiple of 128 ---------------
    D3, B3 = 96, 64
    params3 = init_film_params(k_params3, cond_dim, D3, hidden_dim)
    img3 = jax.random.normal(k_img3, (B3, D3), jnp.float32)
    proprio3 = jax.random.normal(k_prop3, (B3, cond_dim), jnp.float32)
    out3 = jax.block_until_ready(film_forward(img3, proprio3, params3))
    ref3 = film_reference(img3, proprio3, params3)
    assert out3.shape == (B3, D3)
    assert jnp.allclose(out3, ref3, **TOL32)

    # split path + append (concat done wrapper-side for unaligned D).
    out3a = jax.block_until_ready(film_forward(img3, proprio3, params3, append=True))
    ref3a = film_reference(img3, proprio3, params3, append=True)
    assert out3a.shape == (B3, D3 + cond_dim)
    assert jnp.allclose(out3a, ref3a, **TOL32)

    print("KERNEL_OK")
</pallas_src>

<mosaic_0001>
module attributes {stable_mosaic.version = 11 : i64} {
  func.func @_film_kernel_fused(%arg0: i32, %arg1: memref<8x128xf32, #tpu.memory_space<vmem>>, %arg2: memref<8x32xf32, #tpu.memory_space<vmem>>, %arg3: memref<32x64xf32, #tpu.memory_space<vmem>>, %arg4: memref<1x64xf32, #tpu.memory_space<vmem>>, %arg5: memref<64x256xf32, #tpu.memory_space<vmem>>, %arg6: memref<1x256xf32, #tpu.memory_space<vmem>>, %arg7: memref<8x128xf32, #tpu.memory_space<vmem>>) attributes {dimension_semantics = [#tpu.dimension_semantics<parallel>], iteration_bounds = array<i64: 1>, scalar_prefetch = 0 : i64, scratch_operands = 0 : i64, tpu.core_type = #tpu.core_type<tc>, window_params = [{transform_indices = @transform_0, window_bounds = array<i64: 8, 128>}, {transform_indices = @transform_1, window_bounds = array<i64: 8, 32>}, {pipeline_mode = #tpu.pipeline_mode<synchronous>, transform_indices = @transform_2, window_bounds = array<i64: 32, 64>}, {pipeline_mode = #tpu.pipeline_mode<synchronous>, transform_indices = @transform_3, window_bounds = array<i64: 1, 64>}, {pipeline_mode = #tpu.pipeline_mode<synchronous>, transform_indices = @transform_4, window_bounds = array<i64: 64, 256>}, {pipeline_mode = #tpu.pipeline_mode<synchronous>, transform_indices = @transform_5, window_bounds = array<i64: 1, 256>}, {transform_indices = @transform_6, window_bounds = array<i64: 8, 128>}]} {
    %c0 = arith.constant 0 : index
    %c0_0 = arith.constant 0 : index
    %0 = vector.load %arg1[%c0, %c0_0] : memref<8x128xf32, #tpu.memory_space<vmem>>, vector<8x128xf32>
    %c0_1 = arith.constant 0 : index
    %c0_2 = arith.constant 0 : index
    %1 = vector.load %arg2[%c0_1, %c0_2] : memref<8x32xf32, #tpu.memory_space<vmem>>, vector<8x32xf32>
    %c0_3 = arith.constant 0 : index
    %c0_4 = arith.constant 0 : index
    %2 = vector.load %arg3[%c0_3, %c0_4] : memref<32x64xf32, #tpu.memory_space<vmem>>, vector<32x64xf32>
    %cst = arith.constant dense<0.000000e+00> : vector<8x64xf32>
    %3 = tpu.matmul %1, %2, %cst {dimension_numbers = #tpu.dot_dimension_numbers<[1], [0], [0], [1], [0, 0, 1, 1], [], []>} : vector<8x32xf32>, vector<32x64xf32>, vector<8x64xf32> -> vector<8x64xf32>
    %c0_5 = arith.constant 0 : index
    %c0_6 = arith.constant 0 : index
    %4 = vector.load %arg4[%c0_5, %c0_6] : memref<1x64xf32, #tpu.memory_space<vmem>>, vector<1x64xf32>
    %5 = vector.broadcast %4 : vector<1x64xf32> to vector<8x64xf32>
    %6 = arith.addf %3, %5 : vector<8x64xf32>
    %cst_7 = arith.constant 2.000000e+01 : f32
    %7 = vector.broadcast %cst_7 : f32 to vector<8x64xf32>
    %8 = arith.minimumf %6, %7 : vector<8x64xf32>
    %9 = math.exp %8 : vector<8x64xf32>
    %cst_8 = arith.constant 2.000000e+00 : f32
    %10 = vector.broadcast %cst_8 : f32 to vector<8x64xf32>
    %11 = arith.addf %9, %10 : vector<8x64xf32>
    %12 = arith.mulf %9, %11 : vector<8x64xf32>
    %cst_9 = arith.constant 2.000000e+00 : f32
    %13 = vector.broadcast %cst_9 : f32 to vector<8x64xf32>
    %14 = arith.addf %12, %13 : vector<8x64xf32>
    %15 = tpu.reciprocal %14 {approx = true} : vector<8x64xf32> -> vector<8x64xf32>
    %16 = arith.mulf %12, %15 : vector<8x64xf32>
    %17 = arith.mulf %6, %16 : vector<8x64xf32>
    %c0_10 = arith.constant 0 : index
    %c0_11 = arith.constant 0 : index
    %18 = vector.load %arg5[%c0_10, %c0_11] : memref<64x256xf32, #tpu.memory_space<vmem>>, vector<64x256xf32>
    %cst_12 = arith.constant dense<0.000000e+00> : vector<8x256xf32>
    %19 = tpu.matmul %17, %18, %cst_12 {dimension_numbers = #tpu.dot_dimension_numbers<[1], [0], [0], [1], [0, 0, 1, 1], [], []>} : vector<8x64xf32>, vector<64x256xf32>, vector<8x256xf32> -> vector<8x256xf32>
    %c0_13 = arith.constant 0 : index
    %c0_14 = arith.constant 0 : index
    %20 = vector.load %arg6[%c0_13, %c0_14] : memref<1x256xf32, #tpu.memory_space<vmem>>, vector<1x256xf32>
    %21 = vector.broadcast %20 : vector<1x256xf32> to vector<8x256xf32>
    %22 = arith.addf %19, %21 : vector<8x256xf32>
    %23 = vector.extract_strided_slice %22 {offsets = [0, 0], sizes = [8, 128], strides = [1, 1]} : vector<8x256xf32> to vector<8x128xf32>
    %24 = vector.extract_strided_slice %22 {offsets = [0, 128], sizes = [8, 128], strides = [1, 1]} : vector<8x256xf32> to vector<8x128xf32>
    %25 = arith.mulf %23, %0 : vector<8x128xf32>
    %26 = arith.addf %25, %24 : vector<8x128xf32>
    %c0_15 = arith.constant 0 : index
    %c0_16 = arith.constant 0 : index
    %27 = vector.load %arg7[%c0_15, %c0_16] : memref<8x128xf32, #tpu.memory_space<vmem>>, vector<8x128xf32>
    tpu.vector_store %arg7[%c0_15, %c0_16], %26 {strides = array<i32>} : memref<8x128xf32, #tpu.memory_space<vmem>>, vector<8x128xf32>,
    return
  }
  func.func @transform_0(%arg0: i32) -> (i32, i32) {
    %c0_i32 = arith.constant 0 : i32
    %c0_i32_0 = arith.constant 0 : i32
    return %arg0, %c0_i32 : i32, i32
  }
  func.func @transform_1(%arg0: i32) -> (i32, i32) {
    %c0_i32 = arith.constant 0 : i32
    %c0_i32_0 = arith.constant 0 : i32
    return %arg0, %c0_i32 : i32, i32
  }
  func.func @transform_2(%arg0: i32) -> (i32, i32) {
    %c0_i32 = arith.constant 0 : i32
    %c0_i32_0 = arith.constant 0 : i32
    %c0_i32_1 = arith.constant 0 : i32
    return %c0_i32, %c0_i32_0 : i32, i32
  }
  func.func @transform_3(%arg0: i32) -> (i32, i32) {
    %c0_i32 = arith.constant 0 : i32
    %c0_i32_0 = arith.constant 0 : i32
    %c0_i32_1 = arith.constant 0 : i32
    return %c0_i32, %c0_i32_0 : i32, i32
  }
  func.func @transform_4(%arg0: i32) -> (i32, i32) {
    %c0_i32 = arith.constant 0 : i32
    %c0_i32_0 = arith.constant 0 : i32
    %c0_i32_1 = arith.constant 0 : i32
    return %c0_i32, %c0_i32_0 : i32, i32
  }
  func.func @transform_5(%arg0: i32) -> (i32, i32) {
    %c0_i32 = arith.constant 0 : i32
    %c0_i32_0 = arith.constant 0 : i32
    %c0_i32_1 = arith.constant 0 : i32
    return %c0_i32, %c0_i32_0 : i32, i32
  }
  func.func @transform_6(%arg0: i32) -> (i32, i32) {
    %c0_i32 = arith.constant 0 : i32
    %c0_i32_0 = arith.constant 0 : i32
    return %arg0, %c0_i32 : i32, i32
  }
}

</mosaic_0001>

<bundles_post_ra>
// kernel: tpu_custom_call.1
= control target key start
LH: loop header
LB: loop body
LE: loop exit
PB: predicated region body
PF: predicated region fallthrough
CT: control target
= control target key end

     0   :  { %11 = vsyncpa [#allocation3], 0  ;;  %s582_s0 = inlined_call_operand.hbm [shape: f32[8,128], index: 0, kind: input, shape index: {}]   ;;  %s583_s1 = inlined_call_operand.hbm [shape: f32[8,32], index: 1, kind: input, shape index: {}]   ;;  %s584_s2 = inlined_call_operand.hbm [shape: f32[32,64], index: 2, kind: input, shape index: {}]   ;;  %s585_s3 = inlined_call_operand.vmem [shape: f32[1,64], index: 3, kind: input, shape index: {}]   ;;  %s586_s4 = inlined_call_operand.hbm [shape: f32[64,256], index: 4, kind: input, shape index: {}]   ;;  %s587_s5 = inlined_call_operand.vmem [shape: f32[1,256], index: 5, kind: input, shape index: {}]   ;;  %s588_s6 = inlined_call_operand.hbm [shape: f32[8,128], index: 6, kind: output, shape index: {}]  }
   0x1   :  { %12 = vsyncpa [#allocation6], 0 }
   0x2   :  { %13 = vsyncpa [#allocation9], 0 }
   0x3   :  { %14 = vsyncpa [#allocation4], 0  ;;  %s469_s21 = smov [#allocation5]   ;;  %s470_s23 = smov [#allocation2]  }
   0x4   :  { %s31_s22 = sshll.u32 %s469_s21, 4  ;;  %s21_s24 = sshll.u32 %s470_s23, 4  ;;  %s32_s22 = int_to_ptr.vmem [resolvable:$true] %s31_s22  ;;  %s22_s24 = int_to_ptr.vmem [resolvable:$true] %s21_s24 }
   0x5   :  { %s351_s27 = scalar_lea.hbm %s583_s1, 128 }
   0x6   :  { %p352_p0 = scmp.ne.s32.totalorder %s583_s1, %s351_s27  ;;  %p355_p1 = scmp.lt.u32.totalorder %s351_s27, %s583_s1 }
   0x8   :  { %p357_p2 = pnand %p355_p1, %p352_p0 }
   0xa   :  { %360 = shalt.err (!%p357_p2)
}
   0xb   :  { %s361_s8 = scalar_lea.vmem %s32_s22, 128  ;;  %p366_p4 = scmp.lt.s32.totalorder %s32_s22, %s32_s22 }
   0xc   :  { %p362_p3 = scmp.ne.s32.totalorder %s32_s22, %s361_s8  ;;  %p367_p5 = scmp.lt.s32.totalorder %s361_s8, %s361_s8 }
   0xe   :  { %p368_p6 = por %p367_p5, %p366_p4 }
  0x10   :  { %p369_p7 = pnand %p368_p6, %p362_p3 }
  0x12   :  { %372 = shalt.err (!%p369_p7)
}
  0x13   :  { %34 = dma.hbm_to_vmem [thread:$0]  %s583_s1, 128, %s32_s22, [#allocation6]  }
  0x14   :  { %s373_s13 = scalar_lea.hbm %s582_s0, 128 }
  0x15   :  { %p374_p8 = scmp.ne.s32.totalorder %s582_s0, %s373_s13  ;;  %p377_p9 = scmp.lt.u32.totalorder %s373_s13, %s582_s0 }
  0x17   :  { %p379_p10 = pnand %p377_p9, %p374_p8 }
  0x19   :  { %382 = shalt.err (!%p379_p10)
}
  0x1a   :  { %s383_s18 = scalar_lea.vmem %s22_s24, 128  ;;  %p388_p12 = scmp.lt.s32.totalorder %s22_s24, %s22_s24 }
  0x1b   :  { %p384_p11 = scmp.ne.s32.totalorder %s22_s24, %s383_s18  ;;  %p389_p13 = scmp.lt.s32.totalorder %s383_s18, %s383_s18 }
  0x1d   :  { %p390_p0 = por %p389_p13, %p388_p12 }
  0x1f   :  { %p391_p1 = pnand %p390_p0, %p384_p11 }
  0x21   :  { %394 = shalt.err (!%p391_p1)
}
  0x22   :  { %24 = dma.hbm_to_vmem [thread:$0]  %s582_s0, 128, %s22_s24, [#allocation3]  }
  0x23   :  { %s471_s20 = smov [#allocation7]   ;;  %s395_s25 = scalar_lea.hbm %s584_s2, 512 }
  0x24   :  { %s40_s21 = sshll.u32 %s471_s20, 4  ;;  %p396_p2 = scmp.ne.s32.totalorder %s584_s2, %s395_s25  ;;  %s41_s21 = int_to_ptr.vmem [resolvable:$true] %s40_s21 }
  0x25   :  { %p399_p3 = scmp.lt.u32.totalorder %s395_s25, %s584_s2 }
  0x27   :  { %p401_p4 = pnand %p399_p3, %p396_p2 }
  0x29   :  { %404 = shalt.err (!%p401_p4)
}
  0x2a   :  { %s405_s30 = scalar_lea.vmem %s41_s21, 512  ;;  %p410_p6 = scmp.lt.s32.totalorder %s41_s21, %s41_s21 }
  0x2b   :  { %p406_p5 = scmp.ne.s32.totalorder %s41_s21, %s405_s30  ;;  %p411_p7 = scmp.lt.s32.totalorder %s405_s30, %s405_s30 }
  0x2d   :  { %p412_p8 = por %p411_p7, %p410_p6 }
  0x2f   :  { %p413_p9 = pnand %p412_p8, %p406_p5 }
  0x31   :  { %416 = shalt.err (!%p413_p9)
}
  0x32   :  { %s472_s0 = smov 128   ;;  %s473_s24 = smov 8  }
  0x33   :  { %46 = dma.hbm_to_vmem [thread:$0]  %s584_s2, 512, %s41_s21, [#allocation6], %s472_s0, %s472_s0, %s473_s24  }
  0x34   :  { %s474_s9 = smov [#allocation8]   ;;  %s417_s13 = scalar_lea.hbm %s586_s4, 2048 }
  0x35   :  { %s54_s10 = sshll.u32 %s474_s9, 4  ;;  %p418_p10 = scmp.ne.s32.totalorder %s586_s4, %s417_s13  ;;  %s55_s10 = int_to_ptr.vmem [resolvable:$true] %s54_s10 }
  0x36   :  { %p421_p11 = scmp.lt.u32.totalorder %s417_s13, %s586_s4 }
  0x38   :  { %p423_p12 = pnand %p421_p11, %p418_p10 }
  0x3a   :  { %426 = shalt.err (!%p423_p12)
}
  0x3b   :  { %s427_s18 = scalar_lea.vmem %s55_s10, 2048  ;;  %p432_p0 = scmp.lt.s32.totalorder %s55_s10, %s55_s10 }
  0x3c   :  { %p428_p13 = scmp.ne.s32.totalorder %s55_s10, %s427_s18  ;;  %p433_p1 = scmp.lt.s32.totalorder %s427_s18, %s427_s18 }
  0x3e   :  { %p434_p2 = por %p433_p1, %p432_p0 }
  0x40   :  { %p435_p3 = pnand %p434_p2, %p428_p13 }
  0x42   :  { %438 = shalt.err (!%p435_p3)
}
  0x43   :  { %s475_s2 = smov 256   ;;  %s476_s1 = smov 16  }
  0x44   :  { %60 = dma.hbm_to_vmem [thread:$0]  %s586_s4, 2048, %s55_s10, [#allocation9], %s475_s2, %s475_s2, %s476_s1  }
  0x45   :  { %461 = dma.done.wait [#allocation3], 128  }
  0x46   :  { %462 = vsyncadd [#allocation3], 4294967168 }
  0x47   :  { %463 = dma.done.wait [#allocation6], 640  }
  0x48   :  { %464 = vsyncadd [#allocation6], 4294966656 }
  0x49   :  { %465 = dma.done.wait [#allocation9], 2048  }
  0x4a   :  { %466 = vsyncadd [#allocation9], 4294965248  ;;  %v477_v0 = vmov 0.0|0.0   ;;  %vm478_vm0 = vmmov 0   ;;  %v479_v1 = vmov 0.0   ;;  %v77_v2 = vld [vmem:[#allocation7] sm:$0xff]  ;;  %v189_v46 = vlaneseq }
  0x4b   :  { %313 = vmatprep.subr.bf16.mxu0 %v477_v0  ;;  %310 = vmatprep.mubr.msk.f32.mxu0 %vm478_vm0, %v479_v1  ;;  %v78_v3 = vld [vmem:[#allocation7 + $0x8] sm:$0xff]  ;;  %v79_v4 = vld [vmem:[#allocation7 + $0x10] sm:$0xff]  ;;  %v80_v6 = vld [vmem:[#allocation7 + $0x18] sm:$0xff]  ;;  %vm88_vm1 = vcmask 261120   ;;  %vm199_vm2 = vcmask 523264   ;;  %s480_s23 = smov [#allocation10]  }
  0x4c   :  { %267 = vmatprep.mubr.f32.mxu1 %v479_v1  ;;  %v314_v5 = vpack.c.bf16 %v78_v3, %v77_v2  ;;  %v317_v7 = vpack.c.bf16 %v80_v6, %v79_v4  ;;  %v76_v8 = vld [vmem:[#allocation5] sm:$0xff]  ;;  %v172_v9 = vld [vmem:[#allocation8 + $0x8] sm:$0xff]  ;;  %v171_v12 = vld [vmem:[#allocation8] sm:$0xff]  ;;  %v190_v47 = vshrl.u32 %v189_v46, 7  ;;  %s283_s25 = sshll.u32 %s480_s23, 4  ;;  %s284_s25 = int_to_ptr.vmem [resolvable:$true] %s283_s25 }
  0x4d   :  { %v174_v10 = vld [vmem:[#allocation8 + $0x18] sm:$0xff]  ;;  %v173_v13 = vld [vmem:[#allocation8 + $0x10] sm:$0xff]  ;;  %v176_v15 = vld [vmem:[#allocation8 + $0x28] sm:$0xff]  ;;  %s439_s26 = scalar_lea.vmem %s284_s25, 128  ;;  %p444_p5 = scmp.lt.s32.totalorder %s284_s25, %s284_s25 }
  0x4e   :  { %315 = vmatpush3.bf16.msra.mxu0 %v314_v5  ;;  %v319_v11 = vpack.c.bf16 %v174_v10, %v172_v9  ;;  %v321_v14 = vpack.c.bf16 %v173_v13, %v171_v12  ;;  %v178_v16 = vld [vmem:[#allocation8 + $0x38] sm:$0xff]  ;;  %v175_v18 = vld [vmem:[#allocation8 + $0x20] sm:$0xff]  ;;  %v177_v19 = vld [vmem:[#allocation8 + $0x30] sm:$0xff]  ;;  %v191_v48 = vsub.s32 0, %v190_v47  ;;  %v195_v50 = vsub.s32 1, %v190_v47  ;;  %p440_p4 = scmp.ne.s32.totalorder %s284_s25, %s439_s26  ;;  %p445_p6 = scmp.lt.s32.totalorder %s439_s26, %s439_s26 }
  0x4f   :  { %316 = vmatprep.subr.bf16.mxu0 %v477_v0  ;;  %v323_v17 = vpack.c.bf16 %v178_v16, %v176_v15  ;;  %v325_v20 = vpack.c.bf16 %v177_v19, %v175_v18  ;;  %v180_v21 = vld [vmem:[#allocation8 + $0x48] sm:$0xff]  ;;  %v182_v22 = vld [vmem:[#allocation8 + $0x58] sm:$0xff]  ;;  %v179_v24 = vld [vmem:[#allocation8 + $0x40] sm:$0xff] }
  0x50   :  { %320 = vmatprep.subr.bf16.mxu1 %v319_v11  ;;  %v327_v23 = vpack.c.bf16 %v182_v22, %v180_v21  ;;  %v181_v25 = vld [vmem:[#allocation8 + $0x50] sm:$0xff]  ;;  %v184_v27 = vld [vmem:[#allocation8 + $0x68] sm:$0xff]  ;;  %v186_v28 = vld [vmem:[#allocation8 + $0x78] sm:$0xff]  ;;  %p446_p7 = por %p445_p6, %p444_p5 }
  0x51   :  { %322 = vmatpush1.bf16.msra.mxu1 %v321_v14  ;;  %v329_v26 = vpack.c.bf16 %v181_v25, %v179_v24  ;;  %v331_v29 = vpack.c.bf16 %v186_v28, %v184_v27  ;;  %v183_v30 = vld [vmem:[#allocation8 + $0x60] sm:$0xff]  ;;  %v185_v31 = vld [vmem:[#allocation8 + $0x70] sm:$0xff] }
  0x52   :  { %318 = vmatpush3.bf16.msra.mxu0 %v317_v7  ;;  %324 = vmatprep.subr.bf16.mxu1 %v323_v17  ;;  %v333_v32 = vpack.c.bf16 %v185_v31, %v183_v30  ;;  %v294_v33 = vld [vmem:[%s585_s3] ss:$0 sm:$0xff]  ;;  %p447_p8 = pnand %p446_p7, %p440_p4 }
  0x53   :  { %v187_v49 = vld [vmem:[%s587_s5] sm:$0x3] }
  0x54   :  { %v192_v51 = vrot.slane %v187_v49, %v191_v48  ;;  %v196_v52 = vrot.slane %v187_v49, %v195_v50  ;;  %v75_v53 = vld [vmem:[#allocation2] sm:$0xff] }
  0x55   :  { %311 = vmatmul.mubr.msk.f32.vlgmr.msra.gmra.mrb[0].mxu0 %vm88_vm1, %v76_v8  ;;  %326 = vmatpush1.bf16.msra.mxu1 %v325_v20 }
  0x56   :  { %328 = vmatprep.subr.bf16.mxu1 %v327_v23 }
  0x59   :  { %330 = vmatpush1.bf16.msra.mxu1 %v329_v26 }
  0x5a   :  { %332 = vmatprep.subr.bf16.mxu1 %v331_v29 }
  0x5d   :  { %334 = vmatpush1.bf16.msra.mxu1 %v333_v32 }
 0x128   :  { %v158_v34 = vpop.f32.mrb[0].mxu0 }
 0x129   :  { %v159_v35 = vadd.f32 %v294_v33, %v158_v34  ;;  %v312_v36 = vpop.f32.mrb[1].mxu0 }
 0x12b   :  { %v162_v37 = vmin.f32 %v159_v35, 20.0 }
 0x12d   :  { %v163_v38 = vmul.f32 1.442695, %v162_v37 }
 0x12f   :  { %347 = vpow2.f32 %v163_v38 }
 0x139   :  { %v348_v39 = vpop.eup %347 }
 0x13a   :  { %v165_v40 = vadd.f32 2.0, %v348_v39 }
 0x13c   :  { %v166_v41 = vmul.f32 %v348_v39, %v165_v40 }
 0x13e   :  { %v167_v42 = vadd.f32 2.0, %v166_v41 }
 0x140   :  { %349 = vrcp.f32 %v167_v42 }
 0x14a   :  { %v350_v43 = vpop.eup %349 }
 0x14b   :  { %v169_v44 = vmul.f32 %v350_v43, %v166_v41 }
 0x14d   :  { %v170_v45 = vmul.f32 %v169_v44, %v159_v35 }
 0x14f   :  { %296 = vmatmul.mubr.msk.f32.vlgmr.msra.gmra.mrb[0].mxu1 %vm199_vm2, %v170_v45 }
 0x222   :  { %v269_v54 = vpop.f32.mrb[0].mxu1 }
 0x223   :  { %v270_v55 = vadd.f32 %v269_v54, %v192_v51  ;;  %v271_v56 = vpop.f32.mrb[1].mxu1 }
 0x224   :  { %v272_v57 = vadd.f32 %v271_v56, %v196_v52 }
 0x225   :  { %v274_v58 = vmul.f32 %v270_v55, %v75_v53 }
 0x227   :  { %v275_v59 = vadd.f32 %v274_v58, %v272_v57 }
 0x229   :  { %276 = vst [vmem:[#allocation10] sm:$0xff] %v275_v59 }
 0x22a   :  { %450 = shalt.err (!%p447_p8)
}
 0x22b   :  { %s451_s28 = scalar_lea.hbm %s588_s6, 128 }
 0x22c   :  { %p452_p9 = scmp.ne.s32.totalorder %s588_s6, %s451_s28  ;;  %p455_p10 = scmp.lt.u32.totalorder %s451_s28, %s588_s6 }
 0x22e   :  { %p457_p11 = pnand %p455_p10, %p452_p9 }
 0x230   :  { %460 = shalt.err (!%p457_p11)
}
 0x231   :  { %286 = dma.vmem_to_hbm [thread:$0]  %s284_s25, 128, %s588_s6, [#allocation4]  }
 0x232   :  { %467 = dma.done.wait [#allocation4], 128  }
 0x233   :  { %468 = vsyncadd [#allocation4], 4294967168 }
 0x234   :  { %290 = vsyncpa [#allocation3], 1 }
 0x235   :  { %291 = vsyncpa [#allocation6], 1 }
 0x236   :  { %292 = vsyncpa [#allocation9], 1 }
 0x237   :  { %293 = vsyncpa [#allocation4], 1 }

</bundles_post_ra>
